<compile_context>
chip_gen: v7x
topology: tpu7x:2x2x1
jax: 0.10.0
libtpu: 0.0.40
codegen_flags: <defaults>
</compile_context>

<pallas_src>
import functools

import jax
import jax.numpy as jnp
from jax.experimental import pallas as pl
from jax.experimental.pallas import tpu as pltpu


# --------------------------------------------------------------------------------------
# Kernel 1: full prompt assembly (prefix | broadcast ctx | suffix), regional stores.
# --------------------------------------------------------------------------------------
def _assemble_kernel(*refs, fuse_pos):
    if fuse_pos:
        pre_ref, ctx_ref, suf_ref, pos_ref, out_ref = refs
    else:
        pre_ref, ctx_ref, suf_ref, out_ref = refs
        pos_ref = None

    out_dtype = out_ref.dtype
    tile_c = out_ref.shape[1]
    n_ctx = ctx_ref.shape[1]
    d = out_ref.shape[3]
    l_suf = suf_ref.shape[2]

    # pre_ref: (1, TILE_C, 1, D), ctx_ref: (1, n_ctx, D), suf_ref: (1, TILE_C, L_suf, D)
    # out_ref: (1, TILE_C, L, D) with L = 1 + n_ctx + L_suf

    pre = pre_ref[...].astype(out_dtype)
    ctxb = jnp.broadcast_to(ctx_ref[...][:, None, :, :],
                            (1, tile_c, n_ctx, d)).astype(out_dtype)
    suf = suf_ref[...].astype(out_dtype)

    if pos_ref is not None:
        # Fused TextEncoder prologue: prompts + positional_embedding
        pos = pos_ref[...].astype(out_dtype)[None, None, :, :]
        pre = pre + pos[:, :, 0:1, :]
        ctxb = ctxb + pos[:, :, 1:1 + n_ctx, :]
        suf = suf + pos[:, :, 1 + n_ctx:1 + n_ctx + l_suf, :]

    # Three direct regional stores -- no concatenated slab, no extra VMEM temp.
    out_ref[:, :, 0:1, :] = pre
    out_ref[:, :, 1:1 + n_ctx, :] = ctxb
    out_ref[:, :, 1 + n_ctx:1 + n_ctx + l_suf, :] = suf


# --------------------------------------------------------------------------------------
# Kernel 2: in-place ctx-row update of a pre-assembled prompts buffer (fast path).
# --------------------------------------------------------------------------------------
def _ctx_update_kernel(*refs, n_cls, tile_c, fuse_pos):
    if fuse_pos:
        base_ref, ctx_ref, posc_ref, out_ref, bcast_ref, sem_ref = refs
    else:
        base_ref, ctx_ref, out_ref, bcast_ref, sem_ref = refs
        posc_ref = None
    del base_ref  # aliased with out_ref; untouched rows keep the frozen base contents

    n = pl.program_id(0)
    c = pl.program_id(1)
    n_ctx = bcast_ref.shape[1]
    d = bcast_ref.shape[2]

    rows = ctx_ref[...]                      # (1, n_ctx, D), shared across classes
    if posc_ref is not None:
        rows = rows + posc_ref[...][None, :, :]
    bcast_ref[...] = jnp.broadcast_to(rows, (tile_c, n_ctx, d)).astype(bcast_ref.dtype)

    # Clamp the start so a partial last class block overlaps the previous block instead
    # of going out of bounds; the overlap rewrites identical data (ctx is shared).
    c0 = jnp.minimum(c * tile_c, n_cls - tile_c)

    cp = pltpu.make_async_copy(
        bcast_ref,
        out_ref.at[n, pl.ds(c0, tile_c), pl.ds(1, n_ctx), :],
        sem_ref)
    cp.start()
    cp.wait()


# --------------------------------------------------------------------------------------
# VMEM capacity / tiling helpers
# --------------------------------------------------------------------------------------
def _vmem_capacity_bytes():
    try:
        info = pltpu.get_tpu_info()
        cap = getattr(info, "vmem_capacity_bytes", None)
        if cap:
            return int(cap)
    except Exception:
        pass
    try:
        kind = jax.devices()[0].device_kind.lower()
    except Exception:
        kind = ""
    for key, cap in (("v6", 128 << 20), ("v5", 128 << 20), ("v4", 32 << 20),
                     ("v3", 16 << 20), ("v2", 16 << 20), ("7", 64 << 20)):
        if key in kind:
            return cap
    return 64 << 20  # conservative default (v7x per-TC VMEM)


# --------------------------------------------------------------------------------------
# Wrapper 1: full assembly (PromptLearner.forward semantics, class_token_position='end')
# --------------------------------------------------------------------------------------
def prompt_learner_forward(ctx, token_prefix, token_suffix, *, n_cls, N,
                           class_token_position="end", out_dtype=None,
                           positional_embedding=None, tile_c=None):
    """Pallas implementation of PromptLearner.forward() (class_token_position='end').

    ctx:                  (N, n_ctx, D)       shared (non-CSC) learned context
    token_prefix:         (N*n_cls, 1, D)     SOS embedding per prompt row
    token_suffix:         (N*n_cls, L_suf, D) class-name + EOS + pad embeddings
    positional_embedding: optional (L, D)     if given, fuses `prompts + pos_emb`
    returns:              (N*n_cls, 1 + n_ctx + L_suf, D)
    """
    if class_token_position != "end":
        # TODO(synk): 'middle'/'front' need per-class name_lens-dependent (ragged) concat.
        raise NotImplementedError("only class_token_position='end' is implemented")

    NC, one, D = token_prefix.shape
    assert one == 1 and NC == N * n_cls, (token_prefix.shape, N, n_cls)
    n_ctx = ctx.shape[1]
    assert ctx.shape == (N, n_ctx, D), ctx.shape
    L_suf = token_suffix.shape[1]
    assert token_suffix.shape == (NC, L_suf, D), token_suffix.shape
    L = 1 + n_ctx + L_suf

    if out_dtype is None:
        out_dtype = ctx.dtype
    fuse_pos = positional_embedding is not None

    in_item = jnp.dtype(token_prefix.dtype).itemsize
    ctx_item = jnp.dtype(ctx.dtype).itemsize
    out_item = jnp.dtype(out_dtype).itemsize
    pos_item = jnp.dtype(positional_embedding.dtype).itemsize if fuse_pos else 0

    vmem_cap = _vmem_capacity_bytes()

    # ---- tight VMEM accounting (real dtypes, no slab): 2x(pre+suf in blocks + out block)
    #      + 2x(ctx (+pos) blocks), double-buffered by the Pallas pipeline. ----
    per_class = D * ((1 + L_suf) * in_item + L * out_item)
    fixed = n_ctx * D * ctx_item + (L * D * pos_item if fuse_pos else 0)
    if tile_c is None:
        budget = max(vmem_cap - (16 << 20), 16 << 20)   # headroom for Mosaic internals
        tile_c = max(1, (budget // 2 - fixed) // per_class)
    tile_c = int(max(1, min(tile_c, n_cls)))
    num_c_blocks = pl.cdiv(n_cls, tile_c)

    # v7x has 2 TensorCores: make sure the parallel grid has >= 2 blocks.
    if N * num_c_blocks < 2 and n_cls >= 2:
        tile_c = -(-n_cls // 2)
        num_c_blocks = pl.cdiv(n_cls, tile_c)

    block_bytes = tile_c * per_class + fixed
    needed = 2 * block_bytes + (4 << 20)
    vmem_limit = int(min(max(needed, 32 << 20), vmem_cap))

    # ---- view inputs as (N, n_cls, seq, D) so the class axis can be blocked ----
    pre4 = token_prefix.reshape(N, n_cls, 1, D)
    suf4 = token_suffix.reshape(N, n_cls, L_suf, D)

    kernel = functools.partial(_assemble_kernel, fuse_pos=fuse_pos)

    in_specs = [
        pl.BlockSpec((1, tile_c, 1, D), lambda n, c: (n, c, 0, 0)),
        # ctx is shared across classes -> index map ignores c; with c the inner grid
        # axis the block index is unchanged step-to-step so ctx is not re-DMA'd.
        pl.BlockSpec((1, n_ctx, D), lambda n, c: (n, 0, 0)),
        pl.BlockSpec((1, tile_c, L_suf, D), lambda n, c: (n, c, 0, 0)),
    ]
    operands = [pre4, ctx, suf4]
    if fuse_pos:
        assert positional_embedding.shape == (L, D), positional_embedding.shape
        in_specs.append(pl.BlockSpec((L, D), lambda n, c: (0, 0)))
        operands.append(positional_embedding)

    out = pl.pallas_call(
        kernel,
        out_shape=jax.ShapeDtypeStruct((N, n_cls, L, D), out_dtype),
        grid=(N, num_c_blocks),          # class(-block) axis innermost -> ctx reuse
        in_specs=in_specs,
        out_specs=pl.BlockSpec((1, tile_c, L, D), lambda n, c: (n, c, 0, 0)),
        compiler_params=pltpu.CompilerParams(
            dimension_semantics=("parallel", "parallel"),
            vmem_limit_bytes=vmem_limit),
    )(*operands)

    return out.reshape(NC, L, D)


# --------------------------------------------------------------------------------------
# Wrapper 2: fast per-forward path -- only rewrite the ctx rows of a frozen base buffer.
# --------------------------------------------------------------------------------------
def prompt_learner_update_ctx(base_prompts, ctx, *, n_cls, N,
                              positional_embedding=None, tile_c=None):
    """In-place ctx-row update of a pre-assembled prompts buffer.

    base_prompts: (N*n_cls, L, D) frozen prompts (prefix/suffix already in place; if
                  positional_embedding was pre-added to the base, pass it here too so the
                  ctx rows also get their positional-embedding slice).
    ctx:          (N, n_ctx, D)
    returns:      (N*n_cls, L, D) with rows [1, 1+n_ctx) replaced by broadcast ctx.
    """
    NC, L, D = base_prompts.shape
    assert NC == N * n_cls, (base_prompts.shape, N, n_cls)
    n_ctx = ctx.shape[1]
    assert ctx.shape == (N, n_ctx, D), ctx.shape
    assert 1 + n_ctx <= L
    out_dtype = base_prompts.dtype
    itemsize = jnp.dtype(out_dtype).itemsize
    fuse_pos = positional_embedding is not None

    vmem_cap = _vmem_capacity_bytes()
    if tile_c is None:
        budget = max(vmem_cap // 4, 4 << 20)
        tile_c = max(1, budget // (n_ctx * D * itemsize))
    tile_c = int(max(1, min(tile_c, n_cls)))
    num_c_blocks = pl.cdiv(n_cls, tile_c)

    base4 = base_prompts.reshape(N, n_cls, L, D)

    operands = [base4, ctx]
    in_specs = [
        pl.BlockSpec(memory_space=pl.ANY),                       # aliased prompts buffer
        pl.BlockSpec((1, n_ctx, D), lambda n, c: (n, 0, 0)),     # ctx block (re-used per n)
    ]
    if fuse_pos:
        assert positional_embedding.shape[1] == D
        pos_ctx = positional_embedding[1:1 + n_ctx]              # (n_ctx, D)
        operands.append(pos_ctx)
        in_specs.append(pl.BlockSpec((n_ctx, D), lambda n, c: (0, 0)))

    kernel = functools.partial(_ctx_update_kernel, n_cls=n_cls, tile_c=tile_c,
                               fuse_pos=fuse_pos)

    vmem_needed = tile_c * n_ctx * D * itemsize + 4 * n_ctx * D * itemsize + (4 << 20)
    vmem_limit = int(min(max(vmem_needed, 32 << 20), vmem_cap))

    out = pl.pallas_call(
        kernel,
        out_shape=jax.ShapeDtypeStruct((N, n_cls, L, D), out_dtype),
        grid=(N, num_c_blocks),
        in_specs=in_specs,
        out_specs=pl.BlockSpec(memory_space=pl.ANY),
        scratch_shapes=[pltpu.VMEM((tile_c, n_ctx, D), out_dtype),
                        pltpu.SemaphoreType.DMA(())],
        input_output_aliases={0: 0},       # base prompts buffer is updated in place
        compiler_params=pltpu.CompilerParams(
            dimension_semantics=("arbitrary", "arbitrary"),
            vmem_limit_bytes=vmem_limit),
    )(*operands)

    return out.reshape(NC, L, D)


# --------------------------------------------------------------------------------------
# Pure-JAX reference mirroring the PyTorch forward semantics.
# --------------------------------------------------------------------------------------
def prompt_learner_reference(ctx, token_prefix, token_suffix, *, n_cls, N,
                             out_dtype=None, positional_embedding=None):
    n_ctx, D = ctx.shape[1], ctx.shape[2]
    if out_dtype is None:
        out_dtype = ctx.dtype
    # unsqueeze(0).expand(n_cls,...) -> permute(1,0,2,3) -> view(N*n_cls, n_ctx, D)
    ctx_e = jnp.broadcast_to(ctx[None], (n_cls, N, n_ctx, D))
    ctx_e = jnp.transpose(ctx_e, (1, 0, 2, 3)).reshape(N * n_cls, n_ctx, D)
    prompts = jnp.concatenate(
        [token_prefix.astype(out_dtype), ctx_e.astype(out_dtype),
         token_suffix.astype(out_dtype)], axis=1)
    if positional_embedding is not None:
        prompts = prompts + positional_embedding.astype(out_dtype)[None]
    return prompts


if __name__ == "__main__":
    # Small, module-consistent shapes (real CLIP: L=77, D=512, n_cls = #classnames).
    n_cls = 8        # number of class names
    N = 2            # cfg.TRAINER.GLP_OT.N (number of prompt sets)
    n_ctx = 4        # cfg.TRAINER.GLP_OT.N_CTX
    ctx_dim = 128    # clip_model.ln_final.weight.shape[0] (small stand-in)
    seq_len = 16     # CLIP token context length stand-in
    L_suf = seq_len - 1 - n_ctx
    dtype = jnp.float32

    key = jax.random.PRNGKey(0)
    k_ctx, k_pre, k_suf, k_pos = jax.random.split(key, 4)

    # ctx ~ N(0, 0.02) as in nn.init.normal_(ctx_vectors, std=0.02)
    ctx = (0.02 * jax.random.normal(k_ctx, (N, n_ctx, ctx_dim))).astype(dtype)
    # token_prefix / token_suffix stand in for frozen CLIP token embeddings.
    token_prefix = jax.random.normal(k_pre, (N * n_cls, 1, ctx_dim)).astype(dtype)
    token_suffix = jax.random.normal(k_suf, (N * n_cls, L_suf, ctx_dim)).astype(dtype)
    pos_emb = (0.01 * jax.random.normal(k_pos, (seq_len, ctx_dim))).astype(dtype)

    ref = prompt_learner_reference(ctx, token_prefix, token_suffix, n_cls=n_cls, N=N)
    ref_pos = prompt_learner_reference(ctx, token_prefix, token_suffix, n_cls=n_cls, N=N,
                                       positional_embedding=pos_emb)

    # 1) Plain PromptLearner.forward() semantics (regional stores, no slab).
    prompts = prompt_learner_forward(ctx, token_prefix, token_suffix,
                                     n_cls=n_cls, N=N, class_token_position="end")
    prompts = jax.block_until_ready(prompts)
    assert prompts.shape == (N * n_cls, seq_len, ctx_dim), prompts.shape
    assert bool(jnp.allclose(prompts, ref)), "Pallas output mismatch vs reference"

    # 2) Fused with TextEncoder's positional-embedding add (saves one HBM round-trip).
    prompts_pos = prompt_learner_forward(ctx, token_prefix, token_suffix,
                                         n_cls=n_cls, N=N, positional_embedding=pos_emb)
    prompts_pos = jax.block_until_ready(prompts_pos)
    assert bool(jnp.allclose(prompts_pos, ref_pos)), "mismatch (pos-fused)"

    # 3) bf16 output path (halves HBM traffic of this mem-bound copy).
    prompts_bf16 = prompt_learner_forward(ctx, token_prefix, token_suffix,
                                          n_cls=n_cls, N=N, out_dtype=jnp.bfloat16)
    prompts_bf16 = jax.block_until_ready(prompts_bf16)
    assert prompts_bf16.dtype == jnp.bfloat16
    assert bool(jnp.allclose(prompts_bf16.astype(jnp.float32), ref,
                             atol=1e-2, rtol=1e-2)), "mismatch (bf16)"

    # 4) Fast per-forward path: assemble the frozen base once, then only rewrite the
    #    ctx rows in place (input_output_aliases + manual DMA of rows [1, 1+n_ctx)).
    zero_ctx = jnp.zeros_like(ctx)
    base = prompt_learner_forward(zero_ctx, token_prefix, token_suffix, n_cls=n_cls, N=N)
    base = jax.block_until_ready(base)
    fast = prompt_learner_update_ctx(base, ctx, n_cls=n_cls, N=N)
    fast = jax.block_until_ready(fast)
    assert bool(jnp.allclose(fast, ref)), "mismatch (fast ctx-update path)"

    # 4b) Fast path with the positional embedding pre-added into the frozen base.
    base_pos = prompt_learner_forward(zero_ctx, token_prefix, token_suffix,
                                      n_cls=n_cls, N=N, positional_embedding=pos_emb)
    base_pos = jax.block_until_ready(base_pos)
    fast_pos = prompt_learner_update_ctx(base_pos, ctx, n_cls=n_cls, N=N,
                                         positional_embedding=pos_emb)
    fast_pos = jax.block_until_ready(fast_pos)
    assert bool(jnp.allclose(fast_pos, ref_pos)), "mismatch (fast path, pos pre-added)"

    print("KERNEL_OK")
</pallas_src>

<mosaic_0001>
module attributes {stable_mosaic.version = 11 : i64} {
  func.func @_assemble_kernel(%arg0: i32, %arg1: i32, %arg2: memref<1x8x1x128xf32, #tpu.memory_space<vmem>>, %arg3: memref<1x4x128xf32, #tpu.memory_space<vmem>>, %arg4: memref<1x8x11x128xf32, #tpu.memory_space<vmem>>, %arg5: memref<1x8x16x128xf32, #tpu.memory_space<vmem>>) attributes {dimension_semantics = [#tpu.dimension_semantics<parallel>, #tpu.dimension_semantics<parallel>], iteration_bounds = array<i64: 2, 1>, scalar_prefetch = 0 : i64, scratch_operands = 0 : i64, tpu.core_type = #tpu.core_type<tc>, window_params = [{transform_indices = @transform_0, window_bounds = array<i64: 1, 8, 1, 128>}, {transform_indices = @transform_1, window_bounds = array<i64: 1, 4, 128>}, {transform_indices = @transform_2, window_bounds = array<i64: 1, 8, 11, 128>}, {transform_indices = @transform_3, window_bounds = array<i64: 1, 8, 16, 128>}]} {
    %c0 = arith.constant 0 : index
    %c0_0 = arith.constant 0 : index
    %c0_1 = arith.constant 0 : index
    %c0_2 = arith.constant 0 : index
    %0 = vector.load %arg2[%c0, %c0_0, %c0_1, %c0_2] : memref<1x8x1x128xf32, #tpu.memory_space<vmem>>, vector<1x8x1x128xf32>
    %c0_3 = arith.constant 0 : index
    %c0_4 = arith.constant 0 : index
    %c0_5 = arith.constant 0 : index
    %1 = vector.load %arg3[%c0_3, %c0_4, %c0_5] : memref<1x4x128xf32, #tpu.memory_space<vmem>>, vector<1x4x128xf32>
    %2 = vector.shape_cast %1 : vector<1x4x128xf32> to vector<1x1x4x128xf32>
    %3 = vector.shape_cast %2 : vector<1x1x4x128xf32> to vector<1x1x4x128xf32>
    %4 = vector.broadcast %3 : vector<1x1x4x128xf32> to vector<1x8x4x128xf32>
    %c0_6 = arith.constant 0 : index
    %c0_7 = arith.constant 0 : index
    %c0_8 = arith.constant 0 : index
    %c0_9 = arith.constant 0 : index
    %5 = vector.load %arg4[%c0_6, %c0_7, %c0_8, %c0_9] : memref<1x8x11x128xf32, #tpu.memory_space<vmem>>, vector<1x8x11x128xf32>
    %c0_10 = arith.constant 0 : index
    %c0_11 = arith.constant 0 : index
    %c0_12 = arith.constant 0 : index
    %c0_13 = arith.constant 0 : index
    %6 = vector.load %arg5[%c0_10, %c0_11, %c0_12, %c0_13] : memref<1x8x16x128xf32, #tpu.memory_space<vmem>>, vector<1x8x1x128xf32>
    tpu.vector_store %arg5[%c0_10, %c0_11, %c0_12, %c0_13], %0 {strides = array<i32>} : memref<1x8x16x128xf32, #tpu.memory_space<vmem>>, vector<1x8x1x128xf32>,
    %c0_14 = arith.constant 0 : index
    %c0_15 = arith.constant 0 : index
    %c1 = arith.constant 1 : index
    %c0_16 = arith.constant 0 : index
    %7 = vector.load %arg5[%c0_14, %c0_15, %c1, %c0_16] : memref<1x8x16x128xf32, #tpu.memory_space<vmem>>, vector<1x8x4x128xf32>
    tpu.vector_store %arg5[%c0_14, %c0_15, %c1, %c0_16], %4 {strides = array<i32>} : memref<1x8x16x128xf32, #tpu.memory_space<vmem>>, vector<1x8x4x128xf32>,
    %c0_17 = arith.constant 0 : index
    %c0_18 = arith.constant 0 : index
    %c5 = arith.constant 5 : index
    %c0_19 = arith.constant 0 : index
    %8 = vector.load %arg5[%c0_17, %c0_18, %c5, %c0_19] : memref<1x8x16x128xf32, #tpu.memory_space<vmem>>, vector<1x8x11x128xf32>
    tpu.vector_store %arg5[%c0_17, %c0_18, %c5, %c0_19], %5 {strides = array<i32>} : memref<1x8x16x128xf32, #tpu.memory_space<vmem>>, vector<1x8x11x128xf32>,
    return
  }
  func.func @transform_0(%arg0: i32, %arg1: i32) -> (i32, i32, i32, i32) {
    %c0_i32 = arith.constant 0 : i32
    %c0_i32_0 = arith.constant 0 : i32
    %c0_i32_1 = arith.constant 0 : i32
    return %arg0, %arg1, %c0_i32, %c0_i32_0 : i32, i32, i32, i32
  }
  func.func @transform_1(%arg0: i32, %arg1: i32) -> (i32, i32, i32) {
    %c0_i32 = arith.constant 0 : i32
    %c0_i32_0 = arith.constant 0 : i32
    %c0_i32_1 = arith.constant 0 : i32
    return %arg0, %c0_i32, %c0_i32_0 : i32, i32, i32
  }
  func.func @transform_2(%arg0: i32, %arg1: i32) -> (i32, i32, i32, i32) {
    %c0_i32 = arith.constant 0 : i32
    %c0_i32_0 = arith.constant 0 : i32
    %c0_i32_1 = arith.constant 0 : i32
    return %arg0, %arg1, %c0_i32, %c0_i32_0 : i32, i32, i32, i32
  }
  func.func @transform_3(%arg0: i32, %arg1: i32) -> (i32, i32, i32, i32) {
    %c0_i32 = arith.constant 0 : i32
    %c0_i32_0 = arith.constant 0 : i32
    %c0_i32_1 = arith.constant 0 : i32
    return %arg0, %arg1, %c0_i32, %c0_i32_0 : i32, i32, i32, i32
  }
}

</mosaic_0001>

<bundles_post_ra>
// kernel: tpu_custom_call.1
= control target key start
LH: loop header
LB: loop body
LE: loop exit
PB: predicated region body
PF: predicated region fallthrough
CT: control target
= control target key end

     0   :  { %8 = vsyncpa [#allocation3], 0  ;;  %s793_s0 = inlined_call_operand.vmem [shape: f32[2,8,1,128], index: 0, kind: input, shape index: {}]   ;;  %s794_s1 = inlined_call_operand.vmem [shape: f32[2,4,128], index: 1, kind: input, shape index: {}]   ;;  %s795_s2 = inlined_call_operand.vmem [shape: f32[2,8,11,128], index: 2, kind: input, shape index: {}]   ;;  %s796_s3 = inlined_call_operand.hbm [shape: f32[2,8,16,128], index: 3, kind: output, shape index: {}]  }
   0x1   :  { %10 = vsyncpa [#allocation3 + $0x1], 0  ;;  %s613_s12 = smov 0   ;;  %s615_s13 = smov 0  }
   0x2   :  { %s617_s14 = smov 0   ;;  %s619_s15 = smov 0  }
   0x3   :  { %s621_s16 = smov 0   ;;  %s623_s17 = smov 0  }
   0x4 LB: > { %s436_s18 = sadd.s32 4294967295, %s588_s17   ;;  %s437_s19 = sadd.s32 4294967294, %s588_s17   ;;  %s588_s17 = sphi %s623_s17, %s16_s17   ;;  %s584_s16 = sphi %s621_s16, %s803_s16   ;;  %s580_s15 = sphi %s619_s15, %s802_s15   ;;  %s576_s14 = sphi %s617_s14, %s801_s14   ;;  %s572_s13 = sphi %s615_s13, %s800_s13   ;;  %s568_s12 = sphi %s613_s12, %s799_s12  }
   0x5   : > { %s28_s20 = sadd.s32 1, %s584_s16  ;;  %s119_s21 = sadd.s32 1, %s576_s14 }
   0x6   : > { %p30_p0 = scmp.ge.s32.totalorder %s28_s20, 2  ;;  %p129_p1 = scmp.ne.s32.totalorder %s576_s14, %s572_s13 }
   0x7   : > { %p130_p2 = scmp.eq.s32.totalorder %s436_s18, 1  ;;  %p135_p3 = scmp.ne.s32.totalorder %s572_s13, %s568_s12 }
   0x8   : > { %s805_s20 = smov (%p30_p0, %s28_s20), 0  ;;  %p136_p5 = scmp.eq.s32.totalorder %s437_s19, 1 }
   0x9   : > { %p653_p4 = por %p130_p2, %p129_p1  ;;  %s114_s23 = ssub.s32 %s584_s16, %s805_s20 }
   0xa   : > { %p440_p6 = scmp.ge.s32.totalorder %s588_s17, 1  ;;  %p117_p7 = scmp.eq.s32.totalorder %s114_s23, 0 }
   0xb   : > { %p660_p8 = por %p136_p5, %p135_p3  ;;  %p187_p9 = scmp.lt.s32.totalorder %s588_s17, 3 }
   0xc   : > { %s666_s25 = scalar_select %p117_p7, %s576_s14, %s119_s21  }
   0xd   : > { %p188_p10 = pnand %p440_p6, %p187_p9 }
   0xe   : > { %s225_s26 = sand.u32 (!%p188_p10), 1, %s572_s13   ;;  %p229_p11 = scmp.lt.s32.totalorder (!%p188_p10), %s580_s15, 1 }
   0xf   : > { %191 = sbr.rel (%p188_p10) target bundleno = 63 (0x3f), region = 32  ;;  %s441_s27 = sshll.u32 (!%p188_p10), %s225_s26, 7 }
  0x10   : > { %s452_s29 = sshll.u32 (!%p188_p10), %s580_s15, 11  ;;  %s682_s11 = scalar_lea.vmem (!%p188_p10), [#allocation2], %s441_s27 }
  0x11   : > { %s327_s27 = sshll.u32 (!%p188_p10), %s682_s11, 4  ;;  %s590_s5 = smov (!%p188_p10), [#allocation2]   ;;  %s732_s27 = int_to_ptr.vmem [resolvable:$true] %s327_s27 }
  0x12   : > { %s514_s6 = sshll.u32 (!%p188_p10), %s590_s5, 4  ;;  %s515_s6 = int_to_ptr.vmem [resolvable:$false] %s514_s6 }
  0x13   : > { %p517_p1 = scmp.lt.s32.totalorder (!%p188_p10), %s732_s27, %s515_s6 }
  0x16   : > { %s230_s28 = scalar_select %p229_p11, %s580_s15, 1 }
  0x17   : > { %s747_s15 = scalar_lea.sflag [#allocation3], %s225_s26 }
  0x18   : > { %s442_s30 = sshll.u32 %s230_s28, 3  ;;  %s451_s4 = sshll.u32 %s230_s28, 7 }
  0x19   : > { %s235_s7 = scalar_lea.vmem %s793_s0, %s442_s30  ;;  %s680_s10 = scalar_lea.vmem %s795_s2, %s451_s4 }
  0x1a   : > { %v253_v0 = vld [vmem:[%s235_s7] sm:$0x1]  ;;  %v254_v1 = vld [vmem:[%s235_s7 + $0x1] sm:$0x1]  ;;  %v255_v2 = vld [vmem:[%s235_s7 + $0x2] sm:$0x1]  ;;  %s730_s4 = scalar_lea.hbm %s796_s3, %s452_s29 }
  0x1b   : > { %278 = vst [vmem:[%s682_s11] sm:$0x1] %v253_v0  ;;  %279 = vst [vmem:[%s682_s11 + $0x10] sm:$0x1] %v254_v1  ;;  %v256_v3 = vld [vmem:[%s235_s7 + $0x3] sm:$0x1]  ;;  %s443_s18 = sshll.u32 %s230_s28, 2 }
  0x1c   : > { %280 = vst [vmem:[%s682_s11 + $0x20] sm:$0x1] %v255_v2  ;;  %v257_v4 = vld [vmem:[%s235_s7 + $0x4] sm:$0x1]  ;;  %v258_v5 = vld [vmem:[%s235_s7 + $0x5] sm:$0x1]  ;;  %s240_s23 = scalar_lea.vmem %s794_s1, %s443_s18 }
  0x1d   : > { %281 = vst [vmem:[%s682_s11 + $0x30] sm:$0x1] %v256_v3  ;;  %282 = vst [vmem:[%s682_s11 + $0x40] sm:$0x1] %v257_v4  ;;  %v259_v6 = vld [vmem:[%s235_s7 + $0x6] sm:$0x1] }
  0x1e   : > { %283 = vst [vmem:[%s682_s11 + $0x50] sm:$0x1] %v258_v5  ;;  %v260_v7 = vld [vmem:[%s235_s7 + $0x7] sm:$0x1]  ;;  %284 = vst [vmem:[%s682_s11 + $0x60] sm:$0x1] %v259_v6 }
  0x1f   : > { %v262_v8 = vld [vmem:[%s680_s10] sm:$0xff]  ;;  %285 = vst [vmem:[%s682_s11 + $0x70] sm:$0x1] %v260_v7  ;;  %v263_v9 = vld [vmem:[%s680_s10 + $0x8] sm:$0x7]  ;;  %v264_v10 = vld [vmem:[%s680_s10 + $0x10] sm:$0xff] }
  0x20   : > { %294 = vst [vmem:[%s682_s11 + $0x5] sm:$0xff] %v262_v8  ;;  %v265_v11 = vld [vmem:[%s680_s10 + $0x18] sm:$0x7]  ;;  %v261_v12 = vld [vmem:[%s240_s23] sm:$0xf]  ;;  %296 = vst [vmem:[%s682_s11 + $0x15] sm:$0xff] %v264_v10 }
  0x21   : > { %295 = vst [vmem:[%s682_s11 + $0xd] sm:$0x7] %v263_v9  ;;  %297 = vst [vmem:[%s682_s11 + $0x1d] sm:$0x7] %v265_v11  ;;  %v266_v13 = vld [vmem:[%s680_s10 + $0x20] sm:$0xff]  ;;  %v268_v15 = vld [vmem:[%s680_s10 + $0x30] sm:$0xff] }
  0x22   : > { %v267_v14 = vld [vmem:[%s680_s10 + $0x28] sm:$0x7]  ;;  %286 = vst [vmem:[%s682_s11 + $0x1] sm:$0xf] %v261_v12  ;;  %287 = vst [vmem:[%s682_s11 + $0x11] sm:$0xf] %v261_v12 }
  0x23   : > { %288 = vst [vmem:[%s682_s11 + $0x21] sm:$0xf] %v261_v12  ;;  %289 = vst [vmem:[%s682_s11 + $0x31] sm:$0xf] %v261_v12  ;;  %v269_v16 = vld [vmem:[%s680_s10 + $0x38] sm:$0x7] }
  0x24   : > { %290 = vst [vmem:[%s682_s11 + $0x41] sm:$0xf] %v261_v12  ;;  %291 = vst [vmem:[%s682_s11 + $0x51] sm:$0xf] %v261_v12  ;;  %v270_v17 = vld [vmem:[%s680_s10 + $0x40] sm:$0xff]  ;;  %v272_v19 = vld [vmem:[%s680_s10 + $0x50] sm:$0xff] }
  0x25   : > { %292 = vst [vmem:[%s682_s11 + $0x61] sm:$0xf] %v261_v12  ;;  %293 = vst [vmem:[%s682_s11 + $0x71] sm:$0xf] %v261_v12  ;;  %v271_v18 = vld [vmem:[%s680_s10 + $0x48] sm:$0x7] }
  0x26   : > { %298 = vst [vmem:[%s682_s11 + $0x25] sm:$0xff] %v266_v13  ;;  %299 = vst [vmem:[%s682_s11 + $0x2d] sm:$0x7] %v267_v14  ;;  %v273_v20 = vld [vmem:[%s680_s10 + $0x58] sm:$0x7]  ;;  %v274_v21 = vld [vmem:[%s680_s10 + $0x60] sm:$0xff] }
  0x27   : > { %300 = vst [vmem:[%s682_s11 + $0x35] sm:$0xff] %v268_v15  ;;  %301 = vst [vmem:[%s682_s11 + $0x3d] sm:$0x7] %v269_v16  ;;  %v275_v22 = vld [vmem:[%s680_s10 + $0x68] sm:$0x7]  ;;  %v276_v23 = vld [vmem:[%s680_s10 + $0x70] sm:$0xff] }
  0x28   : > { %302 = vst [vmem:[%s682_s11 + $0x45] sm:$0xff] %v270_v17  ;;  %303 = vst [vmem:[%s682_s11 + $0x4d] sm:$0x7] %v271_v18  ;;  %v277_v24 = vld [vmem:[%s680_s10 + $0x78] sm:$0x7]  ;;  %s510_s29 = scalar_lea.vmem %s732_s27, 2048 }
  0x29   : > { %304 = vst [vmem:[%s682_s11 + $0x55] sm:$0xff] %v272_v19  ;;  %305 = vst [vmem:[%s682_s11 + $0x5d] sm:$0x7] %v273_v20  ;;  %p511_p12 = scmp.ne.s32.totalorder %s732_s27, %s510_s29  ;;  %s516_s7 = scalar_lea.vmem %s515_s6, 4096 }
  0x2a   : > { %306 = vst [vmem:[%s682_s11 + $0x65] sm:$0xff] %v274_v21  ;;  %307 = vst [vmem:[%s682_s11 + $0x6d] sm:$0x7] %v275_v22  ;;  %p518_p2 = scmp.lt.s32.totalorder %s516_s7, %s510_s29 }
  0x2b   : > { %308 = vst [vmem:[%s682_s11 + $0x75] sm:$0xff] %v276_v23  ;;  %309 = vst [vmem:[%s682_s11 + $0x7d] sm:$0x7] %v277_v24  ;;  %p512_p13 = pnand %p511_p12, %p653_p4 }
  0x2c   : > { %p519_p3 = por %p518_p2, %p517_p1 }
  0x2d   : > { %p513_p0 = pneg %p512_p13 }
  0x2f   : > { %p520_p5 = pnand %p519_p3, %p513_p0 }
  0x31   : > { %523 = shalt.err (!%p520_p5)
}
  0x32   : > { %s524_s26 = scalar_lea.hbm %s730_s4, 2048  ;;  %s528_s10 = scalar_lea.hbm %s796_s3, 4096 }
  0x33   : > { %p525_p6 = scmp.ne.s32.totalorder %s730_s4, %s524_s26  ;;  %p529_p10 = scmp.lt.u32.totalorder %s730_s4, %s796_s3 }
  0x34   : > { %p530_p11 = scmp.lt.u32.totalorder %s528_s10, %s524_s26  ;;  %p532_p13 = scmp.lt.u32.totalorder %s524_s26, %s730_s4 }
  0x35   : > { %p526_p7 = pnand %p525_p6, %p653_p4 }
  0x36   : > { %p531_p12 = por %p530_p11, %p529_p10 }
  0x37   : > { %p527_p9 = pneg %p526_p7 }
  0x38   : > { %p533_p0 = por %p532_p13, %p531_p12 }
  0x3a   : > { %p534_p1 = pnand %p533_p0, %p527_p9 }
  0x3c   : > { %537 = shalt.err (!%p534_p1)
}
  0x3d   : > { %s591_s19 = smov 128   ;;  %s592_s21 = smov 8  }
  0x3e   : > { %453 = dma.vmem_to_hbm [thread:$0]  (%p653_p4), %s732_s27, 2048, %s730_s4, %s747_s15, %s591_s19, %s591_s19, %s592_s21  }
  0x3f PF: > { %p459_p2 = scmp.ge.s32.totalorder %s588_s17, 2  ;;  %s342_s23 = sand.u32 1, %s568_s12  }
  0x40   : > { %s343_s28 = scalar_lea.sflag [#allocation3], %s342_s23 }
  0x41   : > { %p456_p3 = pnand %p459_p2, %p660_p8 }
  0x43   : > { %563 = dma.done.wait (!%p456_p3), %s343_s28, 2048  }
  0x44   : > { %565 = vsyncadd (!%p456_p3), %s343_s28, 4294965248  ;;  %s16_s17 = sadd.s32 1, %s588_s17   ;;  %s799_s12 = smov %s572_s13 }
  0x45   : > { %p13_p5 = scmp.ge.s32.totalorder %s16_s17, 4   ;;  %s800_s13 = smov %s576_s14 }
  0x46   : > { %s801_s14 = smov %s666_s25  ;;  %s802_s15 = smov %s584_s16 }
  0x47   : > { %s803_s16 = smov %s805_s20  ;;  %15 = sbr.rel (!%p13_p5) target bundleno = 4 (0x4), region = 73 }
  0x4e   :  { %348 = vsyncpa [#allocation3], 1 }
  0x4f   :  { %350 = vsyncpa [#allocation3 + $0x1], 1 }

</bundles_post_ra>
